<compile_context>
chip_gen: v6e
topology: v6e:2x2x1
jax: 0.10.0
libtpu: 0.0.40
codegen_flags: <defaults>
</compile_context>

<pallas_src>
import functools

import jax
import jax.numpy as jnp
from jax.experimental import pallas as pl
from jax.experimental.pallas import tpu as pltpu

_LANES = 128
_ROW_ALIGN = 16  # bf16 sublane tile


def _bce_lovasz_kernel(P, err_ref, gt_ref, ibase_ref, tri_ref, out_ref):
    step = pl.program_id(0)
    nsteps = pl.num_programs(0)

    err = err_ref[...]        # (TR,128) f32  hinge errors, globally sorted descending
    gt = gt_ref[...]          # (TR,128) bf16 0/1 labels in the same sorted order
    ibase = ibase_ref[...]    # (TR,1)  f32   gts - (#positives strictly before this row)
    TR, L = err.shape

    # ---- blocked inclusive cumsum of gt: one MXU matmul + precomputed row prefix ----
    cum_row = jnp.dot(gt, tri_ref[...], preferred_element_type=jnp.float32)  # (TR,128)
    inter = ibase - cum_row                       # = gts - cumsum(gt)[p]   (intersection)

    # ---- global element index p (p1 = p + 1), exact for P < 2^24 ----
    row_i = jax.lax.broadcasted_iota(jnp.int32, (TR, L), 0)
    lane_i = jax.lax.broadcasted_iota(jnp.int32, (TR, L), 1)
    p1 = (row_i * L + lane_i + (step * (TR * L) + 1)).astype(jnp.float32)

    # ---- lovasz_grad, closed form ----
    union = inter + p1                            # = gts + cumsum(1-gt)[p]  (union >= 1)
    inv_u = 1.0 / union
    take_inv = jnp.logical_or(gt > 0.5, p1 < 1.5)  # gt==1 or p==0  ->  grad = 1/union
    grad = jnp.where(take_inv, inv_u, inter * inv_u / (union - 1.0))

    # ---- hinge term: (elu(err) + 1) * grad ----
    elu_p1 = jnp.where(err > 0.0, err + 1.0, jnp.exp(err))

    # ---- BCEWithLogits (mean, pos_weight=None): softplus(err - 1), stable form ----
    t = err - 1.0                                 # = -logit * sign
    bce = jnp.maximum(t, 0.0) + jnp.log(1.0 + jnp.exp(-jnp.abs(t)))

    loss_elem = elu_p1 * grad + bce * (1.0 / P)   # (TR,128)

    def fold_rows(v):
        # (TR,128) -> (8,128) partial sums using sublane-aligned static slices
        acc = v[0:8, :]
        for g in range(1, TR // 8):
            acc = acc + v[g * 8:(g + 1) * 8, :]
        return acc

    out_ref[0] = fold_rows(loss_elem)

    # Padding lives only in the last tile; mask it there, off the hot path.
    @pl.when(step == nsteps - 1)
    def _mask_tail():
        out_ref[0] = fold_rows(jnp.where(p1 <= float(P), loss_elem, 0.0))


def _ceil_to(x, m):
    return ((x + m - 1) // m) * m


@functools.partial(jax.jit, static_argnames=("max_rows_per_tile",))
def bce_lovasz_loss(logit, labels, max_rows_per_tile=512):
    """logit, labels: [B, H, W] float arrays (labels are 0/1). Returns the scalar loss."""
    logit = logit.astype(jnp.float32)
    labels = labels.astype(jnp.float32)
    x = logit.reshape(-1)
    y = labels.reshape(-1)
    P = x.shape[0]  # assumed < 2^24 for exact f32 index / cumsum arithmetic

    # ---- glue (no Pallas sort): hinge errors + descending sort (torch.sort equiv.) ----
    signs = 2.0 * y - 1.0
    errors = 1.0 - x * signs
    perm = jnp.argsort(-errors)
    errors_sorted = errors[perm]
    gt_sorted = y[perm]
    gts = jnp.sum(y)

    # ---- lane-dense (rows,128) layout; tr rows per grid step ----
    rows = -(-P // _LANES)
    tr = min(_ceil_to(max_rows_per_tile, _ROW_ALIGN), _ceil_to(rows, _ROW_ALIGN))
    num_tiles = -(-rows // tr)
    rows_pad = num_tiles * tr
    pad = rows_pad * _LANES - P                   # padding < tr*128 -> last tile only

    err_tiles = jnp.pad(errors_sorted, (0, pad)).reshape(rows_pad, _LANES)
    gt_rows_f32 = jnp.pad(gt_sorted, (0, pad)).reshape(rows_pad, _LANES)
    gt_tiles = gt_rows_f32.astype(jnp.bfloat16)   # 0/1 exact in bf16; halves HBM traffic

    # Cross-row cumsum carry precomputed here (replaces the in-kernel strict-lower
    # matmul and the serial VMEM carry):  ibase[r] = gts - sum(gt in rows < r).
    row_tot = jnp.sum(gt_rows_f32, axis=1)
    ibase = (gts - (jnp.cumsum(row_tot) - row_tot)).reshape(rows_pad, 1)

    # Fixed 128x128 triangular constant (bf16) for the per-row inclusive cumsum (MXU).
    lane = jnp.arange(_LANES, dtype=jnp.int32)
    tri = (lane[:, None] <= lane[None, :]).astype(jnp.bfloat16)   # tri[j,i] = [j <= i]

    partials = pl.pallas_call(
        functools.partial(_bce_lovasz_kernel, P),
        out_shape=jax.ShapeDtypeStruct((num_tiles, 8, _LANES), jnp.float32),
        grid=(num_tiles,),
        in_specs=[
            pl.BlockSpec((tr, _LANES), lambda i: (i, 0)),        # sorted errors (f32)
            pl.BlockSpec((tr, _LANES), lambda i: (i, 0)),        # sorted labels (bf16)
            pl.BlockSpec((tr, 1), lambda i: (i, 0)),             # per-row cumsum base
            pl.BlockSpec((_LANES, _LANES), lambda i: (0, 0)),    # 128x128 tri constant
        ],
        out_specs=pl.BlockSpec((1, 8, _LANES), lambda i: (i, 0, 0)),
        compiler_params=pltpu.CompilerParams(
            dimension_semantics=("parallel",),    # no cross-step state -> megacore-able
        ),
    )(err_tiles, gt_tiles, ibase, tri)
    return jnp.sum(partials)


def _reference_loss(logit, labels):
    """Pure-JAX mirror of the PyTorch module, for verification."""
    x = logit.reshape(-1).astype(jnp.float32)
    y = labels.reshape(-1).astype(jnp.float32)
    signs = 2.0 * y - 1.0
    errors = 1.0 - x * signs
    perm = jnp.argsort(-errors)
    errors_sorted = errors[perm]
    gt_sorted = y[perm]

    gts = gt_sorted.sum()
    intersection = gts - jnp.cumsum(gt_sorted)
    union = gts + jnp.cumsum(1.0 - gt_sorted)
    jacc = 1.0 - intersection / union
    grad = jnp.concatenate([jacc[:1], jacc[1:] - jacc[:-1]])
    elu_p1 = jnp.where(errors_sorted > 0, errors_sorted + 1.0, jnp.exp(errors_sorted))
    lovasz = jnp.dot(elu_p1, grad)

    bce = jnp.maximum(x, 0.0) - x * y + jnp.log1p(jnp.exp(-jnp.abs(x)))
    return lovasz + bce.mean()


if __name__ == "__main__":
    # BCE_Lovasz has no learnable parameters (pos_weight=None).
    key = jax.random.PRNGKey(0)
    k1, k2, k3, k4 = jax.random.split(key, 4)

    # primary small case: [B, H, W] = [2, 16, 16]  (single tile)
    B, H, W = 2, 16, 16
    logit = jax.random.normal(k1, (B, H, W), dtype=jnp.float32) * 2.0
    labels = jax.random.bernoulli(k2, p=0.4, shape=(B, H, W)).astype(jnp.float32)
    loss = bce_lovasz_loss(logit, labels)
    jax.block_until_ready(loss)
    ref = _reference_loss(logit, labels)
    assert jnp.allclose(loss, ref, rtol=1e-4, atol=3e-4), (loss, ref)

    # all-negative labels: exercises the gts == 0 branch of lovasz_grad
    labels0 = jnp.zeros((B, H, W), dtype=jnp.float32)
    loss0 = bce_lovasz_loss(logit, labels0)
    jax.block_until_ready(loss0)
    ref0 = _reference_loss(logit, labels0)
    assert jnp.allclose(loss0, ref0, rtol=1e-4, atol=3e-4), (loss0, ref0)

    # multi-tile case: forces several grid steps, the precomputed cross-row prefix,
    # the parallel grid axis and the last-tile tail masking
    B2, H2, W2 = 2, 95, 97
    logit2 = jax.random.normal(k3, (B2, H2, W2), dtype=jnp.float32) * 2.0
    labels2 = jax.random.bernoulli(k4, p=0.3, shape=(B2, H2, W2)).astype(jnp.float32)
    loss2 = bce_lovasz_loss(logit2, labels2, max_rows_per_tile=32)
    jax.block_until_ready(loss2)
    ref2 = _reference_loss(logit2, labels2)
    assert jnp.allclose(loss2, ref2, rtol=1e-4, atol=3e-4), (loss2, ref2)

    print("KERNEL_OK")
</pallas_src>

<mosaic_0001>
module attributes {stable_mosaic.version = 11 : i64} {
  func.func @_bce_lovasz_kernel(%arg0: i32, %arg1: memref<16x128xf32, #tpu.memory_space<vmem>>, %arg2: memref<16x128xbf16, #tpu.memory_space<vmem>>, %arg3: memref<16x1xf32, #tpu.memory_space<vmem>>, %arg4: memref<128x128xbf16, #tpu.memory_space<vmem>>, %arg5: memref<1x8x128xf32, #tpu.memory_space<vmem>>) attributes {dimension_semantics = [#tpu.dimension_semantics<parallel>], iteration_bounds = array<i64: 1>, scalar_prefetch = 0 : i64, scratch_operands = 0 : i64, tpu.core_type = #tpu.core_type<tc>, window_params = [{transform_indices = @transform_0, window_bounds = array<i64: 16, 128>}, {transform_indices = @transform_1, window_bounds = array<i64: 16, 128>}, {transform_indices = @transform_2, window_bounds = array<i64: 16, 1>}, {pipeline_mode = #tpu.pipeline_mode<synchronous>, transform_indices = @transform_3, window_bounds = array<i64: 128, 128>}, {transform_indices = @transform_4, window_bounds = array<i64: 1, 8, 128>}]} {
    %c0 = arith.constant 0 : index
    %c0_0 = arith.constant 0 : index
    %0 = vector.load %arg1[%c0, %c0_0] : memref<16x128xf32, #tpu.memory_space<vmem>>, vector<16x128xf32>
    %c0_1 = arith.constant 0 : index
    %c0_2 = arith.constant 0 : index
    %1 = vector.load %arg2[%c0_1, %c0_2] : memref<16x128xbf16, #tpu.memory_space<vmem>>, vector<16x128xbf16>
    %c0_3 = arith.constant 0 : index
    %c0_4 = arith.constant 0 : index
    %2 = vector.load %arg3[%c0_3, %c0_4] : memref<16x1xf32, #tpu.memory_space<vmem>>, vector<16x1xf32>
    %c0_5 = arith.constant 0 : index
    %c0_6 = arith.constant 0 : index
    %3 = vector.load %arg4[%c0_5, %c0_6] : memref<128x128xbf16, #tpu.memory_space<vmem>>, vector<128x128xbf16>
    %cst = arith.constant dense<0.000000e+00> : vector<16x128xf32>
    %4 = tpu.matmul %1, %3, %cst {dimension_numbers = #tpu.dot_dimension_numbers<[1], [0], [0], [1], [0, 0, 1, 1], [], []>} : vector<16x128xbf16>, vector<128x128xbf16>, vector<16x128xf32> -> vector<16x128xf32>
    %5 = vector.broadcast %2 : vector<16x1xf32> to vector<16x128xf32>
    %6 = arith.subf %5, %4 : vector<16x128xf32>
    %7 = tpu.iota {dimensions = array<i32: 0>} : vector<16x128xi32>
    %8 = tpu.iota {dimensions = array<i32: 1>} : vector<16x128xi32>
    %c128_i32 = arith.constant 128 : i32
    %9 = vector.broadcast %c128_i32 : i32 to vector<16x128xi32>
    %10 = arith.muli %7, %9 : vector<16x128xi32>
    %11 = arith.addi %10, %8 : vector<16x128xi32>
    %c2048_i32 = arith.constant 2048 : i32
    %12 = arith.muli %arg0, %c2048_i32 : i32
    %c1_i32 = arith.constant 1 : i32
    %13 = arith.addi %12, %c1_i32 : i32
    %14 = vector.broadcast %13 : i32 to vector<16x128xi32>
    %15 = arith.addi %11, %14 : vector<16x128xi32>
    %16 = arith.sitofp %15 : vector<16x128xi32> to vector<16x128xf32>
    %17 = arith.addf %6, %16 : vector<16x128xf32>
    %cst_7 = arith.constant 1.000000e+00 : f32
    %18 = vector.broadcast %cst_7 : f32 to vector<16x128xf32>
    %19 = arith.divf %18, %17 : vector<16x128xf32>
    %cst_8 = arith.constant 5.000000e-01 : bf16
    %20 = vector.broadcast %cst_8 : bf16 to vector<16x128xbf16>
    %21 = arith.cmpf ogt, %1, %20 : vector<16x128xbf16>
    %cst_9 = arith.constant 1.500000e+00 : f32
    %22 = vector.broadcast %cst_9 : f32 to vector<16x128xf32>
    %23 = arith.cmpf olt, %16, %22 : vector<16x128xf32>
    %24 = arith.ori %21, %23 : vector<16x128xi1>
    %25 = arith.mulf %6, %19 : vector<16x128xf32>
    %cst_10 = arith.constant 1.000000e+00 : f32
    %26 = vector.broadcast %cst_10 : f32 to vector<16x128xf32>
    %27 = arith.subf %17, %26 : vector<16x128xf32>
    %28 = arith.divf %25, %27 : vector<16x128xf32>
    %29 = arith.select %24, %19, %28 : vector<16x128xi1>, vector<16x128xf32>
    %cst_11 = arith.constant 0.000000e+00 : f32
    %30 = vector.broadcast %cst_11 : f32 to vector<16x128xf32>
    %31 = arith.cmpf ogt, %0, %30 : vector<16x128xf32>
    %cst_12 = arith.constant 1.000000e+00 : f32
    %32 = vector.broadcast %cst_12 : f32 to vector<16x128xf32>
    %33 = arith.addf %0, %32 : vector<16x128xf32>
    %34 = math.exp %0 : vector<16x128xf32>
    %35 = arith.select %31, %33, %34 : vector<16x128xi1>, vector<16x128xf32>
    %cst_13 = arith.constant 1.000000e+00 : f32
    %36 = vector.broadcast %cst_13 : f32 to vector<16x128xf32>
    %37 = arith.subf %0, %36 : vector<16x128xf32>
    %cst_14 = arith.constant 0.000000e+00 : f32
    %38 = vector.broadcast %cst_14 : f32 to vector<16x128xf32>
    %39 = arith.maximumf %37, %38 : vector<16x128xf32>
    %40 = math.absf %37 : vector<16x128xf32>
    %cst_15 = arith.constant 0.000000e+00 : f32
    %41 = vector.broadcast %cst_15 : f32 to vector<16x128xf32>
    %42 = arith.subf %41, %40 : vector<16x128xf32>
    %43 = math.exp %42 : vector<16x128xf32>
    %cst_16 = arith.constant 1.000000e+00 : f32
    %44 = vector.broadcast %cst_16 : f32 to vector<16x128xf32>
    %45 = arith.addf %44, %43 : vector<16x128xf32>
    %46 = math.log %45 : vector<16x128xf32>
    %47 = arith.addf %39, %46 : vector<16x128xf32>
    %48 = arith.mulf %35, %29 : vector<16x128xf32>
    %cst_17 = arith.constant 0.001953125 : f32
    %49 = vector.broadcast %cst_17 : f32 to vector<16x128xf32>
    %50 = arith.mulf %47, %49 : vector<16x128xf32>
    %51 = arith.addf %48, %50 : vector<16x128xf32>
    %52 = vector.extract_strided_slice %51 {offsets = [0, 0], sizes = [8, 128], strides = [1, 1]} : vector<16x128xf32> to vector<8x128xf32>
    %53 = vector.extract_strided_slice %51 {offsets = [8, 0], sizes = [8, 128], strides = [1, 1]} : vector<16x128xf32> to vector<8x128xf32>
    %54 = arith.addf %52, %53 : vector<8x128xf32>
    %c0_18 = arith.constant 0 : index
    %c0_19 = arith.constant 0 : index
    %c0_20 = arith.constant 0 : index
    %55 = vector.load %arg5[%c0_18, %c0_19, %c0_20] : memref<1x8x128xf32, #tpu.memory_space<vmem>>, vector<1x8x128xf32>
    %56 = vector.shape_cast %55 : vector<1x8x128xf32> to vector<8x128xf32>
    %57 = vector.shape_cast %54 : vector<8x128xf32> to vector<1x8x128xf32>
    tpu.vector_store %arg5[%c0_18, %c0_19, %c0_20], %57 {strides = array<i32>} : memref<1x8x128xf32, #tpu.memory_space<vmem>>, vector<1x8x128xf32>,
    %c0_i32 = arith.constant 0 : i32
    %58 = arith.cmpi eq, %arg0, %c0_i32 : i32
    %59 = arith.extui %58 : i1 to i32
    %c0_i32_21 = arith.constant 0 : i32
    %60 = arith.cmpi ne, %59, %c0_i32_21 : i32
    scf.if %60 {
      %cst_22 = arith.constant 5.120000e+02 : f32
      %61 = vector.broadcast %cst_22 : f32 to vector<16x128xf32>
      %62 = arith.cmpf ole, %16, %61 : vector<16x128xf32>
      %cst_23 = arith.constant 0.000000e+00 : f32
      %63 = vector.broadcast %cst_23 : f32 to vector<16x128xf32>
      %64 = arith.select %62, %51, %63 : vector<16x128xi1>, vector<16x128xf32>
      %65 = vector.extract_strided_slice %64 {offsets = [0, 0], sizes = [8, 128], strides = [1, 1]} : vector<16x128xf32> to vector<8x128xf32>
      %66 = vector.extract_strided_slice %64 {offsets = [8, 0], sizes = [8, 128], strides = [1, 1]} : vector<16x128xf32> to vector<8x128xf32>
      %67 = arith.addf %65, %66 : vector<8x128xf32>
      %c0_24 = arith.constant 0 : index
      %c0_25 = arith.constant 0 : index
      %c0_26 = arith.constant 0 : index
      %68 = vector.load %arg5[%c0_24, %c0_25, %c0_26] : memref<1x8x128xf32, #tpu.memory_space<vmem>>, vector<1x8x128xf32>
      %69 = vector.shape_cast %68 : vector<1x8x128xf32> to vector<8x128xf32>
      %70 = vector.shape_cast %67 : vector<8x128xf32> to vector<1x8x128xf32>
      tpu.vector_store %arg5[%c0_24, %c0_25, %c0_26], %70 {strides = array<i32>} : memref<1x8x128xf32, #tpu.memory_space<vmem>>, vector<1x8x128xf32>,
    } else {
    }
    return
  }
  func.func @transform_0(%arg0: i32) -> (i32, i32) {
    %c0_i32 = arith.constant 0 : i32
    %c0_i32_0 = arith.constant 0 : i32
    return %arg0, %c0_i32 : i32, i32
  }
  func.func @transform_1(%arg0: i32) -> (i32, i32) {
    %c0_i32 = arith.constant 0 : i32
    %c0_i32_0 = arith.constant 0 : i32
    return %arg0, %c0_i32 : i32, i32
  }
  func.func @transform_2(%arg0: i32) -> (i32, i32) {
    %c0_i32 = arith.constant 0 : i32
    %c0_i32_0 = arith.constant 0 : i32
    return %arg0, %c0_i32 : i32, i32
  }
  func.func @transform_3(%arg0: i32) -> (i32, i32) {
    %c0_i32 = arith.constant 0 : i32
    %c0_i32_0 = arith.constant 0 : i32
    %c0_i32_1 = arith.constant 0 : i32
    return %c0_i32, %c0_i32_0 : i32, i32
  }
  func.func @transform_4(%arg0: i32) -> (i32, i32, i32) {
    %c0_i32 = arith.constant 0 : i32
    %c0_i32_0 = arith.constant 0 : i32
    %c0_i32_1 = arith.constant 0 : i32
    return %arg0, %c0_i32, %c0_i32_0 : i32, i32, i32
  }
}

</mosaic_0001>

<bundles_post_ra>
// kernel: bce_lovasz_loss.1
= control target key start
LH: loop header
LB: loop body
LE: loop exit
PB: predicated region body
PF: predicated region fallthrough
CT: control target
= control target key end

     0   :  { %v150_v0 = vlaneseq  ;;  %v323_v1 = vmov 0.0   ;;  %vm324_vm0 = vmmov 0   ;;  %v325_v4 = vmov 0   ;;  %s418_s3 = inlined_call_operand.vmem [shape: bf16[128,128], index: 3, kind: input, shape index: {}]   ;;  %s419_s2 = inlined_call_operand.vmem [shape: f32[16,1], index: 2, kind: input, shape index: {}]   ;;  %s420_s1 = inlined_call_operand.vmem [shape: bf16[16,128], index: 1, kind: input, shape index: {}]   ;;  %s421_s0 = inlined_call_operand.vmem [shape: f32[16,128], index: 0, kind: input, shape index: {}]   ;;  %s422_s4 = inlined_call_operand.vmem [shape: f32[1,8,128], index: 4, kind: output, shape index: {}]  }
   0x1   :  { %270 = vmatprep.subr.bf16.mxu0 %v323_v1  ;;  %v294_v2 = vld [vmem:[%s418_s3 + $0x38] sm:$0xff]   ;;  %286 = vmatprep.mubr.msk.bf16.mxu0 %vm324_vm0, %v323_v1  ;;  %v295_v5 = vld [vmem:[%s418_s3 + $0x30] sm:$0xff]   ;;  %v296_v10 = vld [vmem:[%s418_s3 + $0x28] sm:$0xff]  }
   0x2   :  { %v151_v3 = vshrl.u32 %v150_v0, 7  ;;  %293 = vset.pattern.permute.xlu0 %v325_v4  ;;  %271 = vmatpush3.bf16.msra.mxu0 %v294_v2  ;;  %v154_v6 = vand.u32 127, %v150_v0  ;;  %v25_v14 = vld [vmem:[%s419_s2] sm:$0xff]  ;;  %v26_v18 = vld [vmem:[%s419_s2 + $0x8] sm:$0xff]  ;;  %v298_v22 = vld [vmem:[%s418_s3 + $0x18] sm:$0xff]  }
   0x3   :  { %272 = vmatprep.subr.bf16.mxu0 %v323_v1  ;;  %140 = vperm.xlu0 %293, %v25_v14   ;;  %v297_v16 = vld [vmem:[%s418_s3 + $0x20] sm:$0xff]   ;;  %v299_v25 = vld [vmem:[%s418_s3 + $0x10] sm:$0xff]   ;;  %v300_v26 = vld [vmem:[%s418_s3 + $0x8] sm:$0xff]  }
   0x4   :  { %v152_v7 = vadd.s32 8, %v151_v3  ;;  %v155_v8 = vmul.u32 128, %v151_v3  ;;  %v23_v19 = vld [vmem:[%s420_s1] sm:$0xf]  ;;  %v24_v21 = vld [vmem:[%s420_s1 + $0x4] sm:$0xf] }
   0x5   :  { %vm172_vm2 = vcmp.gt.bf16.partialorder %v23_v19, 1056980736  ;;  %vm173_vm5 = vcmp.gt.bf16.partialorder %v24_v21, 1056980736  ;;  %v301_v27 = vld [vmem:[%s418_s3] sm:$0xff]   ;;  %v248_v28 = vcombine.low %v23_v19, %v24_v21  ;;  %v403_v30 = vld [vmem:[%s421_s0 + $0x8] sm:$0xff] }
   0x6   :  { %v156_v9 = vmul.u32 128, %v152_v7  ;;  %273 = vmatpush3.bf16.msra.mxu0 %v295_v5  ;;  %v157_v11 = vadd.s32 %v155_v8, %v154_v6  ;;  %v21_v29 = vld [vmem:[%s421_s0] sm:$0xff]  ;;  %v260_v32 = vadd.f32 -1.0, %v403_v30  ;;  %v202_v51 = vmul.f32 1.442695, %v403_v30 }
   0x7   :  { %274 = vmatprep.subr.bf16.mxu0 %v323_v1  ;;  %145 = vperm.xlu0 %293, %v26_v18   ;;  %v259_v31 = vadd.f32 -1.0, %v21_v29  ;;  %v200_v45 = vmul.f32 1.442695, %v21_v29  ;;  %v198_v63 = vadd.f32 1.0, %v21_v29  ;;  %vm196_vm9 = vcmp.gt.f32.partialorder %v21_v29, 0.0 }
   0x8   :  { %v158_v12 = vadd.s32 %v156_v9, %v154_v6  ;;  %v162_v13 = vadd.s32 1, %v157_v11  ;;  %v211_v34 = vand.u32 2147483647, %v260_v32  ;;  %vm197_vm11 = vcmp.gt.f32.partialorder %v403_v30, 0.0 }
   0x9   :  { %v210_v33 = vand.u32 2147483647, %v259_v31  ;;  %v208_v60 = vmax.f32 %v259_v31, 0.0 }
   0xa   :  { %v163_v15 = vadd.s32 1, %v158_v12  ;;  %275 = vmatpush3.bf16.msra.mxu0 %v296_v10  ;;  %v366_v17 = vcvt.s32.f32 %v162_v13  ;;  %v213_v36 = vsub.f32 0.0, %v211_v34  ;;  %v199_v10 = vadd.f32 1.0, %v403_v30 }
   0xb   :  { %276 = vmatprep.subr.bf16.mxu0 %v323_v1  ;;  %v212_v35 = vsub.f32 0.0, %v210_v33 }
   0xc   :  { %v374_v20 = vcvt.s32.f32 %v163_v15  ;;  %vm174_vm1 = vcmp.lt.f32.partialorder %v366_v17, 1.5  ;;  %v216_v38 = vmul.f32 1.442695, %v213_v36  ;;  %vm238_vm13 = vcmp.le.f32.partialorder %v366_v17, 512.0 }
   0xd   :  { %vm176_vm4 = vmpackc.low %vm174_vm1, %vm174_vm1  ;;  %v214_v37 = vmul.f32 1.442695, %v212_v35 }
   0xe   :  { %vm175_vm3 = vcmp.lt.f32.partialorder %v374_v20, 1.5  ;;  %277 = vmatpush3.bf16.msra.mxu0 %v297_v16  ;;  %vm178_vm7 = vmor %vm172_vm2, %vm176_vm4  ;;  %vm239_vm14 = vcmp.le.f32.partialorder %v374_v20, 512.0 }
   0xf   :  { %vm177_vm6 = vmpackc.low %vm175_vm3, %vm175_vm3  ;;  %278 = vmatprep.subr.bf16.mxu0 %v323_v1  ;;  %v384_v23 = vsel %vm178_vm7, 65537, %v325_v4  ;;  %303 = vpow2.f32 %v214_v37 }
  0x10   :  { %vm179_vm8 = vmor %vm173_vm5, %vm177_vm6  ;;  %305 = vpow2.f32 %v216_v38  ;;  %v190_v59 = vunpack.c.l.b16 %v384_v23 }
  0x11   :  { %v386_v24 = vsel %vm179_vm8, 65537, %v325_v4 }
  0x12   :  { %279 = vmatpush3.bf16.msra.mxu0 %v298_v22  ;;  %v191_v5 = vunpack.c.l.b16 %v386_v24  ;;  %vm192_vm10 = vcmp.ne.s32.totalorder %v190_v59, 0 }
  0x13   :  { %280 = vmatprep.subr.bf16.mxu0 %v323_v1 }
  0x14   :  { %vm193_vm12 = vcmp.ne.s32.totalorder %v191_v5, 0 }
  0x16   :  { %281 = vmatpush3.bf16.msra.mxu0 %v299_v25 }
  0x17   :  { %282 = vmatprep.subr.bf16.mxu0 %v323_v1 }
  0x1a   :  { %283 = vmatpush3.bf16.msra.mxu0 %v300_v26 }
  0x1b   :  { %284 = vmatprep.subr.bf16.mxu0 %v323_v1  ;;  %v209_v1 = vmax.f32 %v260_v32, 0.0 }
  0x1c   :  { %v304_v39 = vpop.eup %303 }
  0x1d   :  { %v306_v40 = vpop.eup %305  ;;  %v218_v41 = vadd.f32 1.0, %v304_v39 }
  0x1e   :  { %285 = vmatpush3.bf16.msra.mxu0 %v301_v27  ;;  %v219_v43 = vadd.f32 1.0, %v306_v40 }
  0x1f   :  { %307 = vlog2.f32 %v218_v41 }
  0x20   :  { %309 = vlog2.f32 %v219_v43 }
  0x21   :  { %287 = vmatmul.mubr.bf16.vlgmr.msra.gmra.mxu0 %v248_v28  ;;  %311 = vpow2.f32 %v200_v45 }
  0x2c   :  { %v308_v57 = vpop.eup %307 }
  0x2d   :  { %v310_v58 = vpop.eup %309  ;;  %v221_v61 = vmul.f32 0.6931472, %v308_v57 }
  0x2e   :  { %v312_v62 = vpop.eup %311  ;;  %v223_v2 = vmul.f32 0.6931472, %v310_v58 }
  0x2f   :  { %v224_v6 = vadd.f32 %v221_v61, %v208_v60  ;;  %v204_v9 = vsel %vm196_vm9, %v198_v63, %v312_v62 }
  0x30   :  { %v225_v12 = vadd.f32 %v223_v2, %v209_v1 }
  0x31   :  { %v228_v18 = vmul.f32 0.001953125, %v224_v6 }
  0x32   :  { %v229_v22 = vmul.f32 0.001953125, %v225_v12 }
  0x7e   :  { %v141_v42 = vpop.permute.xlu0 %140 }
  0x82   :  { %v146_v49 = vpop.permute.xlu0 %145 }
  0xe1   :  { %v131_v44 = vpop.f32.mrf.mxu0 }
  0xe2   :  { %v148_v46 = vsub.f32 %v141_v42, %v131_v44 }
  0xe3   :  { %v288_v47 = vpop.f32.mrf.mxu0 }
  0xe4   :  { %v166_v48 = vadd.f32 %v366_v17, %v148_v46 }
  0xe5   :  { %v134_v50 = vpop.f32.mrf.mxu0 }
  0xe6   :  { %313 = vrcp.f32 %v166_v48  ;;  %v257_v52 = vadd.f32 -1.0, %v166_v48  ;;  %v149_v53 = vsub.f32 %v146_v49, %v134_v50 }
  0xe7   :  { %v289_v54 = vpop.f32.mrf.mxu0 }
  0xe8   :  { %315 = vrcp.f32 %v257_v52  ;;  %v167_v55 = vadd.f32 %v374_v20, %v149_v53 }
  0xe9   :  { %317 = vpow2.f32 %v202_v51 }
  0xea   :  { %319 = vrcp.f32 %v167_v55  ;;  %v258_v56 = vadd.f32 -1.0, %v167_v55 }
  0xec   :  { %321 = vrcp.f32 %v258_v56 }
  0xf3   :  { %v314_v0 = vpop.eup %313 }
  0xf4   :  { %v180_v3 = vmul.f32 %v314_v0, %v148_v46 }
  0xf5   :  { %v316_v4 = vpop.eup %315 }
  0xf6   :  { %v318_v7 = vpop.eup %317  ;;  %v185_v8 = vmul.f32 %v316_v4, %v180_v3 }
  0xf7   :  { %v320_v11 = vpop.eup %319  ;;  %v205_v21 = vsel %vm197_vm11, %v199_v10, %v318_v7 }
  0xf8   :  { %v194_v13 = vsel %vm192_vm10, %v314_v0, %v185_v8  ;;  %v181_v14 = vmul.f32 %v320_v11, %v149_v53 }
  0xf9   :  { %v322_v15 = vpop.eup %321  ;;  %v226_v16 = vmul.f32 %v204_v9, %v194_v13 }
  0xfa   :  { %v187_v19 = vmul.f32 %v322_v15, %v181_v14 }
  0xfb   :  { %v230_v24 = vadd.f32 %v228_v18, %v226_v16 }
  0xfc   :  { %v195_v23 = vsel %vm193_vm12, %v320_v11, %v187_v19 }
  0xfd   :  { %v227_v25 = vmul.f32 %v205_v21, %v195_v23  ;;  %v240_v27 = vsel %vm238_vm13, %v230_v24, 0.0 }
  0xff   :  { %v231_v26 = vadd.f32 %v229_v22, %v227_v25 }
 0x101   :  { %v241_v28 = vsel %vm239_vm14, %v231_v26, 0.0 }
 0x102   :  { %v242_v29 = vadd.f32 %v241_v28, %v240_v27 }
 0x104   :  { %243 = vst [vmem:[%s422_s4] sm:$0xff] %v242_v29 }

</bundles_post_ra>
